<compile_context>
chip_gen: v6e
topology: v6e:2x2x1
jax: 0.10.0
libtpu: 0.0.40
codegen_flags: <defaults>
</compile_context>

<pallas_src>
import functools

import jax
import jax.numpy as jnp
from jax.experimental import pallas as pl
from jax.experimental.pallas import tpu as pltpu


def _round_up(v, m):
    return ((v + m - 1) // m) * m


def _gga_kernel(x_ref, wab_ref, bab_ref, wct_ref, bc_ref, o_ref,
                *, half, matmul_dtype):
    """One row-tile of the gated-attention pooling forward.

    x_ref   : (tm, D)   input rows (original dtype; cast in-kernel)
    wab_ref : (D, NP)   fused [Wa | 0 | Wb | 0] projection (matmul_dtype)
    bab_ref : (1, NP)   fused [ba | 0 | bb | 0] bias (f32)
    wct_ref : (O, NP)   Wc^T zero-padded on the lane axis (matmul_dtype)
    bc_ref  : (O, 1)    output bias (f32)
    o_ref   : (O, tm)   transposed output tile (lane-dense stores)
    """
    x = x_ref[...].astype(matmul_dtype)                                   # (tm, D)
    # Single MXU pass producing [a_pre | pad | b_pre | pad] with f32 accum.
    y = jnp.dot(x, wab_ref[...],
                preferred_element_type=jnp.float32) + bab_ref[...]        # (tm, NP)
    # tanh on the low half-lanes, sigmoid on the high half-lanes; no
    # sub-lane-tile slices (H=32 slices would force lane relayout copies).
    lane = jax.lax.broadcasted_iota(jnp.int32, y.shape, 1)
    act = jnp.where(lane < half, jnp.tanh(y), jax.nn.sigmoid(y))          # (tm, NP)
    # Rotate by exactly half the (128-multiple) lane axis so sigmoid(b_pre)
    # lands under tanh(a_pre).  shift == axis/2 is its own inverse, so the
    # roll direction convention is irrelevant.  Runs on the XLU (has slack).
    act_rot = pltpu.roll(act, half, 1)
    gated = (act * act_rot).astype(matmul_dtype)                          # lanes [0,H): a*b
    # Transposed second matmul -> (O, tm): lane-dense output stores.  Lanes
    # >= H of `gated` are garbage but multiply zero rows of Wc^T (all finite,
    # so exact zeros).
    out_t = jax.lax.dot_general(
        wct_ref[...], gated,
        dimension_numbers=(((1,), (1,)), ((), ())),
        preferred_element_type=jnp.float32)                               # (O, tm)
    o_ref[...] = (out_t + bc_ref[...]).astype(o_ref.dtype)


def _choose_row_tile(M, tm_req):
    rd128 = lambda v: max(128, (v // 128) * 128)
    # Hard cap keeps per-step VMEM (x tile + intermediates, lane-padded to 128)
    # in the low tens of MiB -> safe under v7x's 64 MiB/TC with headroom.
    tm = rd128(min(tm_req, 8192))
    # Don't tile past the (padded) data for tiny inputs.
    tm = min(tm, _round_up(max(M, 1), 128))
    # Keep >= 4 grid steps (>= 2 per v7x TensorCore) once the input is big
    # enough for that to matter.
    if M >= 4 * 128:
        tm = min(tm, rd128(M // 4))
    return max(128, tm)


def global_gated_attention_pooling(x, wa, ba, wb, bb, wc, bc,
                                   *, tm=4096, use_bf16_matmul=True):
    """x: (B, S, D).  Weights are (in, out); biases (out,).  Returns (B, S, O).

    Eval-mode forward of GlobalGatedAttentionPooling:
        A = (tanh(x @ Wa + ba) * sigmoid(x @ Wb + bb)) @ Wc + bc
    With use_bf16_matmul=True the matmul operands are bf16 (f32 accumulation);
    tanh/sigmoid run in f32 either way.
    """
    B, S, D = x.shape
    H = wa.shape[1]
    O = wc.shape[1]
    M = B * S

    matmul_dtype = jnp.bfloat16 if use_bf16_matmul else jnp.float32
    wsize = jnp.dtype(matmul_dtype).itemsize

    # --- row tile + zero-pad rows so the grid covers them exactly -------------
    tm = _choose_row_tile(M, tm)
    M_pad = pl.cdiv(M, tm) * tm
    x2d = x.reshape(M, D)
    if M_pad != M:
        x2d = jnp.pad(x2d, ((0, M_pad - M), (0, 0)))

    # --- fused, lane-padded, pre-cast weights (grid-invariant) ----------------
    half = _round_up(H, 64)          # a_pre lives in lanes [0,H), b_pre in [half, half+H)
    NP = 2 * half                    # multiple of 128 -> full lane tiles, cheap roll
    w_ab = jnp.zeros((D, NP), jnp.float32)
    w_ab = w_ab.at[:, :H].set(wa).at[:, half:half + H].set(wb).astype(matmul_dtype)
    b_ab = jnp.zeros((1, NP), jnp.float32)
    b_ab = b_ab.at[0, :H].set(ba).at[0, half:half + H].set(bb)
    wc_t = jnp.zeros((O, NP), jnp.float32).at[:, :H].set(wc.T).astype(matmul_dtype)
    bc2 = bc.reshape(O, 1).astype(jnp.float32)

    kernel = functools.partial(_gga_kernel, half=half, matmul_dtype=matmul_dtype)
    grid = (M_pad // tm,)

    cost = pl.CostEstimate(
        flops=2 * M_pad * D * NP + 2 * M_pad * NP * O,
        transcendentals=2 * M_pad * NP,
        bytes_accessed=(M_pad * D * x.dtype.itemsize          # x read
                        + M_pad * O * x.dtype.itemsize        # out write
                        + D * NP * wsize + NP * 4              # fused W / bias
                        + O * NP * wsize + O * 4),             # Wc^T / bias
    )

    out_t = pl.pallas_call(
        kernel,
        out_shape=jax.ShapeDtypeStruct((O, M_pad), x.dtype),
        grid_spec=pltpu.PrefetchScalarGridSpec(
            num_scalar_prefetch=0,
            grid=grid,
            in_specs=[
                pl.BlockSpec((tm, D), lambda i: (i, 0)),      # x rows
                pl.BlockSpec((D, NP), lambda i: (0, 0)),      # fused Wa|Wb
                pl.BlockSpec((1, NP), lambda i: (0, 0)),      # fused ba|bb
                pl.BlockSpec((O, NP), lambda i: (0, 0)),      # Wc^T (lane-padded)
                pl.BlockSpec((O, 1), lambda i: (0, 0)),       # bc
            ],
            out_specs=pl.BlockSpec((O, tm), lambda i: (0, i)),
        ),
        compiler_params=pltpu.CompilerParams(
            dimension_semantics=("parallel",),
            # Safe on all generations (v7x physical VMEM = 64 MiB/TC); actual
            # use at tm=4096 is ~10-15 MiB including double buffering.
            vmem_limit_bytes=48 * 1024 * 1024,
        ),
        cost_estimate=cost,
    )(x2d, w_ab, b_ab, wc_t, bc2)

    # Tiny (O, M) transpose in the wrapper; padded rows are sliced off.
    return out_t[:, :M].T.reshape(B, S, O)


def _init_linear(key, fan_in, fan_out):
    """Deterministic init mimicking torch.nn.Linear default (uniform +-1/sqrt(fan_in)).
    Weight returned transposed to (in, out) for x @ W."""
    k_w, k_b = jax.random.split(key)
    bound = 1.0 / jnp.sqrt(fan_in)
    w = jax.random.uniform(k_w, (fan_in, fan_out), jnp.float32, -bound, bound)
    b = jax.random.uniform(k_b, (fan_out,), jnp.float32, -bound, bound)
    return w, b


def _reference(x, wa, ba, wb, bb, wc, bc):
    a = jnp.tanh(x @ wa + ba)
    b = jax.nn.sigmoid(x @ wb + bb)
    return (a * b) @ wc + bc


if __name__ == "__main__":
    input_dim, hidden_dim, output_dim = 32, 32, 8

    key = jax.random.PRNGKey(0)
    kx1, kx2, ka, kb, kc = jax.random.split(key, 5)

    wa, ba = _init_linear(ka, input_dim, hidden_dim)
    wb, bb = _init_linear(kb, input_dim, hidden_dim)
    wc, bc = _init_linear(kc, hidden_dim, output_dim)

    # Case 1: exact-f32 path (batch=2, seq=8) — tight tolerance.
    x1 = jax.random.normal(kx1, (2, 8, input_dim), jnp.float32)
    out1 = jax.block_until_ready(
        global_gated_attention_pooling(x1, wa, ba, wb, bb, wc, bc,
                                       use_bf16_matmul=False))
    ref1 = _reference(x1, wa, ba, wb, bb, wc, bc)
    assert out1.shape == (2, 8, output_dim)
    assert jnp.allclose(out1, ref1, atol=1e-5, rtol=1e-5), "mismatch (f32 path)"

    # Case 2: default bf16-operand path (f32 accumulation) — looser tolerance.
    out2 = jax.block_until_ready(
        global_gated_attention_pooling(x1, wa, ba, wb, bb, wc, bc))
    assert out2.shape == (2, 8, output_dim)
    assert jnp.allclose(out2, ref1, atol=3e-2, rtol=3e-2), "mismatch (bf16 path)"

    # Case 3: non-tile-aligned row count (batch=3, seq=7) exercises padding.
    x2 = jax.random.normal(kx2, (3, 7, input_dim), jnp.float32)
    out3 = jax.block_until_ready(
        global_gated_attention_pooling(x2, wa, ba, wb, bb, wc, bc,
                                       use_bf16_matmul=False))
    ref3 = _reference(x2, wa, ba, wb, bb, wc, bc)
    assert out3.shape == (3, 7, output_dim)
    assert jnp.allclose(out3, ref3, atol=1e-5, rtol=1e-5), "mismatch (padded path)"

    print("KERNEL_OK")
</pallas_src>

<mosaic_0001>
module attributes {stable_mosaic.version = 11 : i64} {
  func.func @_gga_kernel(%arg0: i32, %arg1: memref<128x32xf32, #tpu.memory_space<vmem>>, %arg2: memref<32x128xf32, #tpu.memory_space<vmem>>, %arg3: memref<1x128xf32, #tpu.memory_space<vmem>>, %arg4: memref<8x128xf32, #tpu.memory_space<vmem>>, %arg5: memref<8x1xf32, #tpu.memory_space<vmem>>, %arg6: memref<8x128xf32, #tpu.memory_space<vmem>>) attributes {dimension_semantics = [#tpu.dimension_semantics<parallel>], iteration_bounds = array<i64: 1>, scalar_prefetch = 0 : i64, scratch_operands = 0 : i64, tpu.core_type = #tpu.core_type<tc>, window_params = [{transform_indices = @transform_0, window_bounds = array<i64: 128, 32>}, {pipeline_mode = #tpu.pipeline_mode<synchronous>, transform_indices = @transform_1, window_bounds = array<i64: 32, 128>}, {pipeline_mode = #tpu.pipeline_mode<synchronous>, transform_indices = @transform_2, window_bounds = array<i64: 1, 128>}, {pipeline_mode = #tpu.pipeline_mode<synchronous>, transform_indices = @transform_3, window_bounds = array<i64: 8, 128>}, {pipeline_mode = #tpu.pipeline_mode<synchronous>, transform_indices = @transform_4, window_bounds = array<i64: 8, 1>}, {transform_indices = @transform_5, window_bounds = array<i64: 8, 128>}]} {
    %c0 = arith.constant 0 : index
    %c0_0 = arith.constant 0 : index
    %0 = vector.load %arg1[%c0, %c0_0] : memref<128x32xf32, #tpu.memory_space<vmem>>, vector<128x32xf32>
    %c0_1 = arith.constant 0 : index
    %c0_2 = arith.constant 0 : index
    %1 = vector.load %arg2[%c0_1, %c0_2] : memref<32x128xf32, #tpu.memory_space<vmem>>, vector<32x128xf32>
    %cst = arith.constant dense<0.000000e+00> : vector<128x128xf32>
    %2 = tpu.matmul %0, %1, %cst {dimension_numbers = #tpu.dot_dimension_numbers<[1], [0], [0], [1], [0, 0, 1, 1], [], []>} : vector<128x32xf32>, vector<32x128xf32>, vector<128x128xf32> -> vector<128x128xf32>
    %c0_3 = arith.constant 0 : index
    %c0_4 = arith.constant 0 : index
    %3 = vector.load %arg3[%c0_3, %c0_4] : memref<1x128xf32, #tpu.memory_space<vmem>>, vector<1x128xf32>
    %4 = vector.broadcast %3 : vector<1x128xf32> to vector<128x128xf32>
    %5 = arith.addf %2, %4 : vector<128x128xf32>
    %6 = tpu.iota {dimensions = array<i32: 1>} : vector<128x128xi32>
    %c64_i32 = arith.constant 64 : i32
    %7 = vector.broadcast %c64_i32 : i32 to vector<128x128xi32>
    %8 = arith.cmpi slt, %6, %7 : vector<128x128xi32>
    %9 = math.tanh %5 : vector<128x128xf32>
    %10 = arith.negf %5 : vector<128x128xf32>
    %11 = math.exp %10 : vector<128x128xf32>
    %cst_5 = arith.constant 1.000000e+00 : f32
    %12 = vector.broadcast %cst_5 : f32 to vector<128x128xf32>
    %13 = arith.addf %12, %11 : vector<128x128xf32>
    %14 = arith.divf %12, %13 : vector<128x128xf32>
    %15 = arith.select %8, %9, %14 : vector<128x128xi1>, vector<128x128xf32>
    %c64_i32_6 = arith.constant 64 : i32
    %16 = tpu.dynamic_rotate %15 by %c64_i32_6 dim 1 : vector<128x128xf32>, i32 -> vector<128x128xf32>
    %17 = arith.mulf %15, %16 : vector<128x128xf32>
    %c0_7 = arith.constant 0 : index
    %c0_8 = arith.constant 0 : index
    %18 = vector.load %arg4[%c0_7, %c0_8] : memref<8x128xf32, #tpu.memory_space<vmem>>, vector<8x128xf32>
    %cst_9 = arith.constant dense<0.000000e+00> : vector<8x128xf32>
    %19 = tpu.matmul %18, %17, %cst_9 {dimension_numbers = #tpu.dot_dimension_numbers<[1], [1], [0], [0], [0, 0, 1, 0], [], []>} : vector<8x128xf32>, vector<128x128xf32>, vector<8x128xf32> -> vector<8x128xf32>
    %c0_10 = arith.constant 0 : index
    %c0_11 = arith.constant 0 : index
    %20 = vector.load %arg5[%c0_10, %c0_11] : memref<8x1xf32, #tpu.memory_space<vmem>>, vector<8x1xf32>
    %21 = vector.broadcast %20 : vector<8x1xf32> to vector<8x128xf32>
    %22 = arith.addf %19, %21 : vector<8x128xf32>
    %c0_12 = arith.constant 0 : index
    %c0_13 = arith.constant 0 : index
    %23 = vector.load %arg6[%c0_12, %c0_13] : memref<8x128xf32, #tpu.memory_space<vmem>>, vector<8x128xf32>
    tpu.vector_store %arg6[%c0_12, %c0_13], %22 {strides = array<i32>} : memref<8x128xf32, #tpu.memory_space<vmem>>, vector<8x128xf32>,
    return
  }
  func.func @transform_0(%arg0: i32) -> (i32, i32) {
    %c0_i32 = arith.constant 0 : i32
    %c0_i32_0 = arith.constant 0 : i32
    return %arg0, %c0_i32 : i32, i32
  }
  func.func @transform_1(%arg0: i32) -> (i32, i32) {
    %c0_i32 = arith.constant 0 : i32
    %c0_i32_0 = arith.constant 0 : i32
    %c0_i32_1 = arith.constant 0 : i32
    return %c0_i32, %c0_i32_0 : i32, i32
  }
  func.func @transform_2(%arg0: i32) -> (i32, i32) {
    %c0_i32 = arith.constant 0 : i32
    %c0_i32_0 = arith.constant 0 : i32
    %c0_i32_1 = arith.constant 0 : i32
    return %c0_i32, %c0_i32_0 : i32, i32
  }
  func.func @transform_3(%arg0: i32) -> (i32, i32) {
    %c0_i32 = arith.constant 0 : i32
    %c0_i32_0 = arith.constant 0 : i32
    %c0_i32_1 = arith.constant 0 : i32
    return %c0_i32, %c0_i32_0 : i32, i32
  }
  func.func @transform_4(%arg0: i32) -> (i32, i32) {
    %c0_i32 = arith.constant 0 : i32
    %c0_i32_0 = arith.constant 0 : i32
    %c0_i32_1 = arith.constant 0 : i32
    return %c0_i32, %c0_i32_0 : i32, i32
  }
  func.func @transform_5(%arg0: i32) -> (i32, i32) {
    %c0_i32 = arith.constant 0 : i32
    %c0_i32_0 = arith.constant 0 : i32
    return %c0_i32, %arg0 : i32, i32
  }
}

</mosaic_0001>

<bundles_post_ra>
// kernel: tpu_custom_call.1
= control target key start
LH: loop header
LB: loop body
LE: loop exit
PB: predicated region body
PF: predicated region fallthrough
CT: control target
= control target key end

     0   :  { %vm48_vm0 = vcmask 261120   ;;  %s1067_s0 = inlined_call_operand.vmem [shape: f32[128,32], index: 0, kind: input, shape index: {}]   ;;  %s1068_s1 = inlined_call_operand.vmem [shape: f32[32,128], index: 1, kind: input, shape index: {}]   ;;  %s1069_s2 = inlined_call_operand.vmem [shape: f32[1,128], index: 2, kind: input, shape index: {}]   ;;  %s1070_s3 = inlined_call_operand.vmem [shape: f32[8,128], index: 3, kind: input, shape index: {}]   ;;  %s1071_s4 = inlined_call_operand.vmem [shape: f32[8,1], index: 4, kind: input, shape index: {}]   ;;  %s1072_s5 = inlined_call_operand.hbm [shape: f32[8,128], index: 5, kind: output, shape index: {}]  }
   0x1   :  { %v40_v0 = vld [vmem:[%s1068_s1 + $0x18] sm:$0xff]  ;;  %v39_v1 = vld [vmem:[%s1068_s1 + $0x10] sm:$0xff]  ;;  %v21_v2 = vld [vmem:[%s1067_s0] sm:$0xff] }
   0x2   :  { %583 = vmatprep.subr.mxu0 %v40_v0  ;;  %v38_v3 = vld [vmem:[%s1068_s1 + $0x8] sm:$0xff]  ;;  %591 = vmatprep.mubr.msk.f32.mxu0 %vm48_vm0, %v21_v2  ;;  %v37_v4 = vld [vmem:[%s1068_s1] sm:$0xff] }
   0x3   :  { %584 = vmatpush3.msra.mxu0 %v40_v0  ;;  %v22_v5 = vld [vmem:[%s1067_s0 + $0x8] sm:$0xff] }
   0x4   :  { %585 = vmatprep.subr.mxu0 %v39_v1 }
   0x5   :  { %586 = vmatpush3.msra.mxu0 %v39_v1 }
   0x6   :  { %587 = vmatprep.subr.mxu0 %v38_v3 }
   0x7   :  { %588 = vmatpush3.msra.mxu0 %v38_v3 }
   0x8   :  { %10 = vsyncpa [#allocation3], 0  ;;  %589 = vmatprep.subr.mxu0 %v37_v4  ;;  %v23_v6 = vld [vmem:[%s1067_s0 + $0x10] sm:$0xff]  ;;  %v24_v7 = vld [vmem:[%s1067_s0 + $0x18] sm:$0xff]  ;;  %vm776_vm2 = vmmov 0   ;;  %s778_s10 = smov [#allocation2]  }
   0x9   :  { %590 = vmatpush3.msra.mxu0 %v37_v4  ;;  %v25_v8 = vld [vmem:[%s1067_s0 + $0x20] sm:$0xff]  ;;  %v26_v9 = vld [vmem:[%s1067_s0 + $0x28] sm:$0xff]  ;;  %v27_v10 = vld [vmem:[%s1067_s0 + $0x30] sm:$0xff]  ;;  %s505_s11 = sshll.u32 %s778_s10, 4  ;;  %s506_s11 = int_to_ptr.vmem [resolvable:$true] %s505_s11 }
   0xa   :  { %592 = vmatmul.mubr.msk.f32.vlgmr.msra.gmra.mxu0 %vm48_vm0, %v22_v5  ;;  %v28_v11 = vld [vmem:[%s1067_s0 + $0x38] sm:$0xff]  ;;  %v29_v12 = vld [vmem:[%s1067_s0 + $0x40] sm:$0xff]  ;;  %v30_v13 = vld [vmem:[%s1067_s0 + $0x48] sm:$0xff]  ;;  %s752_s12 = scalar_lea.vmem %s506_s11, 128  ;;  %p757_p1 = scmp.lt.s32.totalorder %s506_s11, %s506_s11 }
   0xb   :  { %594 = vmatprep.mubr.msk.f32.mxu0 %vm48_vm0, %v23_v6  ;;  %v31_v14 = vld [vmem:[%s1067_s0 + $0x50] sm:$0xff]  ;;  %v32_v15 = vld [vmem:[%s1067_s0 + $0x58] sm:$0xff]  ;;  %v33_v16 = vld [vmem:[%s1067_s0 + $0x60] sm:$0xff]  ;;  %p753_p0 = scmp.ne.s32.totalorder %s506_s11, %s752_s12  ;;  %p758_p2 = scmp.lt.s32.totalorder %s752_s12, %s752_s12 }
   0xc   :  { %v34_v17 = vld [vmem:[%s1067_s0 + $0x68] sm:$0xff]  ;;  %v35_v18 = vld [vmem:[%s1067_s0 + $0x70] sm:$0xff]  ;;  %v36_v19 = vld [vmem:[%s1067_s0 + $0x78] sm:$0xff]  ;;  %s775_s0 = smov 64  }
   0xd   :  { %v513_v34 = vld [vmem:[%s1069_s2] ss:$0 sm:$0xff]  ;;  %p759_p3 = por %p758_p2, %p757_p1 }
   0xe   :  { %595 = vmatmul.mubr.msk.f32.gmra.mxu0 %vm48_vm0, %v24_v7 }
   0xf   :  { %597 = vmatprep.mubr.msk.f32.mxu0 %vm48_vm0, %v25_v8  ;;  %p760_p4 = pnand %p759_p3, %p753_p0 }
  0x12   :  { %598 = vmatmul.mubr.msk.f32.gmra.mxu0 %vm48_vm0, %v26_v9 }
  0x13   :  { %600 = vmatprep.mubr.msk.f32.mxu0 %vm48_vm0, %v27_v10 }
  0x16   :  { %601 = vmatmul.mubr.msk.f32.gmra.mxu0 %vm48_vm0, %v28_v11 }
  0x17   :  { %603 = vmatprep.mubr.msk.f32.mxu0 %vm48_vm0, %v29_v12 }
  0x1a   :  { %604 = vmatmul.mubr.msk.f32.gmra.mxu0 %vm48_vm0, %v30_v13 }
  0x1b   :  { %606 = vmatprep.mubr.msk.f32.mxu0 %vm48_vm0, %v31_v14 }
  0x1e   :  { %607 = vmatmul.mubr.msk.f32.gmra.mxu0 %vm48_vm0, %v32_v15 }
  0x1f   :  { %609 = vmatprep.mubr.msk.f32.mxu0 %vm48_vm0, %v33_v16 }
  0x22   :  { %610 = vmatmul.mubr.msk.f32.gmra.mxu0 %vm48_vm0, %v34_v17 }
  0x23   :  { %612 = vmatprep.mubr.msk.f32.mxu0 %vm48_vm0, %v35_v18 }
  0x26   :  { %613 = vmatmul.mubr.msk.f32.gmra.mxu0 %vm48_vm0, %v36_v19  ;;  %v242_v19 = vlaneseq }
  0xca   :  { %v593_v20 = vpop.f32.mrf.mxu0 }
  0xcb   :  { %v890_v38 = vadd.f32 %v593_v20, %v513_v34 }
  0xcc   :  { %v163_v21 = vpop.f32.mrf.mxu0 }
  0xcd   :  { %v892_v40 = vadd.f32 %v513_v34, %v163_v21  ;;  %v531_v45 = vmul.f32 -1.442695, %v890_v38 }
  0xce   :  { %v596_v22 = vpop.f32.mrf.mxu0 }
  0xcf   :  { %v530_v49 = vmul.f32 -1.442695, %v892_v40  ;;  %v903_v51 = vadd.f32 %v596_v22, %v513_v34 }
  0xd0   :  { %v173_v23 = vpop.f32.mrf.mxu0 }
  0xd1   :  { %v908_v55 = vadd.f32 %v513_v34, %v173_v23  ;;  %v533_v59 = vmul.f32 -1.442695, %v903_v51 }
  0xd2   :  { %v599_v24 = vpop.f32.mrf.mxu0 }
  0xd3   :  { %v532_v63 = vmul.f32 -1.442695, %v908_v55  ;;  %v922_v1 = vadd.f32 %v599_v24, %v513_v34 }
  0xd4   :  { %v183_v25 = vpop.f32.mrf.mxu0 }
  0xd5   :  { %v915_v60 = vadd.f32 %v513_v34, %v183_v25  ;;  %v535_v5 = vmul.f32 -1.442695, %v922_v1 }
  0xd6   :  { %v602_v26 = vpop.f32.mrf.mxu0 }
  0xd7   :  { %v917_v61 = vadd.f32 %v602_v26, %v513_v34  ;;  %v534_v2 = vmul.f32 -1.442695, %v915_v60  ;;  %v932_v26 = vand.u32 127, %v242_v19 }
  0xd8   :  { %v193_v27 = vpop.f32.mrf.mxu0 }
  0xd9   :  { %v906_v53 = vadd.f32 %v513_v34, %v193_v27  ;;  %v537_v3 = vmul.f32 -1.442695, %v917_v61  ;;  %v774_v27 = vmov 0.0   ;;  %vm244_vm1 = vcmp.lt.s32.totalorder %v932_v26, 64 }
  0xda   :  { %v605_v28 = vpop.f32.mrf.mxu0  ;;  %615 = vmatprep.subr.mxu1 %v774_v27  ;;  %647 = vmatprep.mubr.msk.f32.mxu1 %vm776_vm2, %v774_v27 }
  0xdb   :  { %v911_v57 = vadd.f32 %v605_v28, %v513_v34  ;;  %v536_v62 = vmul.f32 -1.442695, %v906_v53 }
  0xdc   :  { %v203_v29 = vpop.f32.mrf.mxu0 }
  0xdd   :  { %v894_v42 = vadd.f32 %v513_v34, %v203_v29  ;;  %v539_v0 = vmul.f32 -1.442695, %v911_v57 }
  0xde   :  { %v608_v30 = vpop.f32.mrf.mxu0 }
  0xdf   :  { %v898_v47 = vadd.f32 %v608_v30, %v513_v34  ;;  %v538_v52 = vmul.f32 -1.442695, %v894_v42 }
  0xe0   :  { %v213_v31 = vpop.f32.mrf.mxu0 }
  0xe1   :  { %v888_v36 = vadd.f32 %v513_v34, %v213_v31  ;;  %v541_v56 = vmul.f32 -1.442695, %v898_v47 }
  0xe2   :  { %v611_v32 = vpop.f32.mrf.mxu0 }
  0xe3   :  { %v229_v35 = vadd.f32 %v611_v32, %v513_v34  ;;  %v540_v43 = vmul.f32 -1.442695, %v888_v36 }
  0xe4   :  { %v223_v33 = vpop.f32.mrf.mxu0 }
  0xe5   :  { %v224_v39 = vadd.f32 %v513_v34, %v223_v33  ;;  %v543_v41 = vmul.f32 -1.442695, %v229_v35 }
  0xe6   :  { %v614_v37 = vpop.f32.mrf.mxu0 }
  0xe7   :  { %v239_v46 = vadd.f32 %v614_v37, %v513_v34  ;;  %v542_v48 = vmul.f32 -1.442695, %v224_v39  ;;  %656 = vpow2.f32 %v543_v41 }
  0xe8   :  { %v233_v44 = vpop.f32.mrf.mxu0  ;;  %658 = vpow2.f32 %v540_v43 }
  0xe9   :  { %v901_v50 = vadd.f32 %v513_v34, %v233_v44  ;;  %660 = vpow2.f32 %v531_v45  ;;  %v545_v54 = vmul.f32 -1.442695, %v239_v46 }
  0xea   :  { %662 = vpow2.f32 %v542_v48 }
  0xeb   :  { %664 = vpow2.f32 %v530_v49  ;;  %v544_v58 = vmul.f32 -1.442695, %v901_v50 }
  0xec   :  { %666 = vpow2.f32 %v538_v52 }
  0xed   :  { %668 = vpow2.f32 %v545_v54 }
  0xee   :  { %670 = vpow2.f32 %v541_v56 }
  0xef   :  { %672 = vpow2.f32 %v544_v58 }
  0xf0   :  { %674 = vpow2.f32 %v533_v59 }
  0xf1   :  { %676 = vpow2.f32 %v536_v62 }
  0xf2   :  { %678 = vpow2.f32 %v532_v63 }
  0xf3   :  { %680 = vpow2.f32 %v539_v0 }
  0xf4   :  { %v657_v4 = vpop.eup %656  ;;  %682 = vpow2.f32 %v534_v2 }
  0xf5   :  { %v659_v6 = vpop.eup %658  ;;  %684 = vpow2.f32 %v537_v3  ;;  %v322_v7 = vadd.f32 1.0, %v657_v4 }
  0xf6   :  { %v927_v8 = vpop.eup %660  ;;  %686 = vtanh.f32 %v229_v35  ;;  %v319_v11 = vadd.f32 1.0, %v659_v6 }
  0xf7   :  { %v663_v9 = vpop.eup %662  ;;  %688 = vrcp.f32 %v322_v7  ;;  %v310_v0 = vadd.f32 1.0, %v927_v8 }
  0xf8   :  { %v929_v10 = vpop.eup %664  ;;  %690 = vpow2.f32 %v535_v5  ;;  %v321_v12 = vadd.f32 1.0, %v663_v9 }
  0xf9   :  { %v667_v13 = vpop.eup %666  ;;  %692 = vtanh.f32 %v224_v39 }
  0xfa   :  { %v669_v14 = vpop.eup %668  ;;  %694 = vrcp.f32 %v321_v12  ;;  %v317_v18 = vadd.f32 1.0, %v667_v13 }
  0xfb   :  { %v671_v15 = vpop.eup %670  ;;  %696 = vtanh.f32 %v239_v46  ;;  %v324_v16 = vadd.f32 1.0, %v669_v14 }
  0xfc   :  { %v673_v17 = vpop.eup %672  ;;  %698 = vrcp.f32 %v319_v11  ;;  %v320_v24 = vadd.f32 1.0, %v671_v15 }
  0xfd   :  { %v675_v20 = vpop.eup %674  ;;  %700 = vrcp.f32 %v324_v16  ;;  %v323_v21 = vadd.f32 1.0, %v673_v17 }
  0xfe   :  { %v677_v22 = vpop.eup %676  ;;  %702 = vtanh.f32 %v888_v36  ;;  %v312_v58 = vadd.f32 1.0, %v675_v20 }
  0xff   :  { %v679_v23 = vpop.eup %678  ;;  %704 = vrcp.f32 %v323_v21  ;;  %v315_v29 = vadd.f32 1.0, %v677_v22 }
 0x100   :  { %v681_v25 = vpop.eup %680  ;;  %706 = vrcp.f32 %v317_v18  ;;  %v311_v44 = vadd.f32 1.0, %v679_v23 }
 0x101   :  { %v683_v28 = vpop.eup %682  ;;  %708 = vtanh.f32 %v901_v50  ;;  %v318_v32 = vadd.f32 1.0, %v681_v25  ;;  %v777_v25 = vmov 0  }
 0x102   :  { %v685_v30 = vpop.eup %684  ;;  %710 = vtanh.f32 %v894_v42  ;;  %v313_v35 = vadd.f32 1.0, %v683_v28  ;;  %655 = vset.pattern.permute.xlu0 %v777_v25 }
 0x103   :  { %v687_v31 = vpop.eup %686  ;;  %712 = vrcp.f32 %v320_v24  ;;  %v316_v41 = vadd.f32 1.0, %v685_v30  ;;  %v422_v24 = vld [vmem:[%s1071_s4] sm:$0xff] }
 0x104   :  { %v689_v33 = vpop.eup %688  ;;  %714 = vtanh.f32 %v898_v47 }
 0x105   :  { %v691_v34 = vpop.eup %690  ;;  %716 = vrcp.f32 %v315_v29  ;;  %v941_v36 = vsel %vm244_vm1, %v687_v31, %v689_v33 }
 0x106   :  { %v693_v37 = vpop.eup %692  ;;  %718 = vtanh.f32 %v906_v53  ;;  %399 = vrot.lane.b32.xlu1 %v941_v36, %s775_s0  ;;  %v314_v48 = vadd.f32 1.0, %v691_v34  ;;  %v309_v53 = vadd.f32 1.0, %v929_v10 }
 0x107   :  { %v695_v39 = vpop.eup %694  ;;  %720 = vrcp.f32 %v318_v32 }
 0x108   :  { %v697_v42 = vpop.eup %696  ;;  %722 = vtanh.f32 %v911_v57  ;;  %v949_v45 = vsel %vm244_vm1, %v693_v37, %v695_v39 }
 0x109   :  { %v699_v43 = vpop.eup %698  ;;  %724 = vrcp.f32 %v313_v35 }
 0x10a   :  { %v701_v46 = vpop.eup %700  ;;  %726 = vtanh.f32 %v915_v60  ;;  %397 = vrot.lane.b32.xlu1 %v949_v45, %s775_s0 }
 0x10b   :  { %v703_v47 = vpop.eup %702  ;;  %728 = vrcp.f32 %v316_v41  ;;  %v956_v49 = vsel %vm244_vm1, %v697_v42, %v701_v46 }
 0x10c   :  { %v705_v50 = vpop.eup %704  ;;  %730 = vtanh.f32 %v917_v61  ;;  %403 = vrot.lane.b32.xlu0 %v956_v49, %s775_s0  ;;  %v964_v54 = vsel %vm244_vm1, %v703_v47, %v699_v43 }
 0x10d   :  { %v707_v52 = vpop.eup %706  ;;  %732 = vrcp.f32 %v311_v44 }
 0x10e   :  { %v709_v56 = vpop.eup %708  ;;  %734 = vtanh.f32 %v908_v55  ;;  %393 = vrot.lane.b32.xlu1 %v964_v54, %s775_s0 }
 0x10f   :  { %v711_v57 = vpop.eup %710  ;;  %736 = vrcp.f32 %v314_v48  ;;  %v971_v59 = vsel %vm244_vm1, %v709_v56, %v705_v50 }
 0x110   :  { %v713_v60 = vpop.eup %712  ;;  %738 = vtanh.f32 %v922_v1  ;;  %401 = vrot.lane.b32.xlu0 %v971_v59, %s775_s0  ;;  %v978_v55 = vsel %vm244_vm1, %v711_v57, %v707_v52 }
 0x111   :  { %v715_v61 = vpop.eup %714  ;;  %740 = vrcp.f32 %v309_v53 }
 0x112   :  { %v717_v62 = vpop.eup %716  ;;  %742 = vtanh.f32 %v892_v40  ;;  %389 = vrot.lane.b32.xlu1 %v978_v55, %s775_s0  ;;  %v368_v1 = vsel %vm244_vm1, %v715_v61, %v713_v60 }
 0x113   :  { %v719_v63 = vpop.eup %718  ;;  %744 = vrcp.f32 %v312_v58 }
 0x114   :  { %v721_v2 = vpop.eup %720  ;;  %395 = vrot.lane.b32.xlu0 %v368_v1, %s775_s0  ;;  %746 = vtanh.f32 %v903_v51  ;;  %v990_v4 = vsel %vm244_vm1, %v719_v63, %v717_v62  ;;  %v421_v62 = vld [vmem:[%s1070_s3] sm:$0xff] }
 0x115   :  { %v723_v3 = vpop.eup %722  ;;  %748 = vrcp.f32 %v310_v0 }
 0x116   :  { %v725_v40 = vpop.eup %724  ;;  %385 = vrot.lane.b32.xlu1 %v990_v4, %s775_s0  ;;  %v366_v6 = vsel %vm244_vm1, %v723_v3, %v721_v2  ;;  %750 = vtanh.f32 %v890_v38 }
 0x117   :  { %v727_v5 = vpop.eup %726 }
 0x118   :  { %v729_v7 = vpop.eup %728  ;;  %391 = vrot.lane.b32.xlu0 %v366_v6, %s775_s0  ;;  %v1000_v51 = vsel %vm244_vm1, %v727_v5, %v725_v40 }
 0x119   :  { %v731_v8 = vpop.eup %730 }
 0x11a   :  { %v733_v9 = vpop.eup %732  ;;  %381 = vrot.lane.b32.xlu1 %v1000_v51, %s775_s0  ;;  %v364_v11 = vsel %vm244_vm1, %v731_v8, %v729_v7 }
 0x11b   :  { %v735_v10 = vpop.eup %734 }
 0x11c   :  { %v737_v12 = vpop.eup %736  ;;  %387 = vrot.lane.b32.xlu0 %v364_v11, %s775_s0  ;;  %v1009_v14 = vsel %vm244_vm1, %v735_v10, %v733_v9 }
 0x11d   :  { %v739_v13 = vpop.eup %738 }
 0x11e   :  { %v741_v38 = vpop.eup %740  ;;  %377 = vrot.lane.b32.xlu1 %v1009_v14, %s775_s0  ;;  %v362_v16 = vsel %vm244_vm1, %v739_v13, %v737_v12 }
 0x11f   :  { %v743_v15 = vpop.eup %742 }
 0x120   :  { %v745_v17 = vpop.eup %744  ;;  %383 = vrot.lane.b32.xlu0 %v362_v16, %s775_s0  ;;  %v1018_v18 = vsel %vm244_vm1, %v743_v15, %v741_v38 }
 0x121   :  { %v747_v19 = vpop.eup %746 }
 0x122   :  { %373 = vrot.lane.b32.xlu1 %v1018_v18, %s775_s0  ;;  %v360_v20 = vsel %vm244_vm1, %v747_v19, %v745_v17  ;;  %v749_v21 = vpop.eup %748 }
 0x123   :  { %v751_v22 = vpop.eup %750 }
 0x124   :  { %379 = vrot.lane.b32.xlu0 %v360_v20, %s775_s0  ;;  %v1027_v23 = vsel %vm244_vm1, %v751_v22, %v749_v21 }
 0x128   :  { %375 = vrot.lane.b32.xlu0 %v1027_v23, %s775_s0 }
 0x12c   :  { %425 = vperm.xlu0 %655, %v422_v24  }
 0x178   :  { %v400_v26 = vpop.permute.xlu1 %399 }
 0x179   :  { %v418_v32 = vmul.f32 %v400_v26, %v941_v36 }
 0x17c   :  { %v398_v33 = vpop.permute.xlu1 %397 }
 0x17d   :  { %v417_v34 = vmul.f32 %v398_v33, %v949_v45 }
 0x17e   :  { %v404_v28 = vpop.permute.xlu0 %403 }
 0x17f   :  { %v420_v29 = vmul.f32 %v404_v28, %v956_v49 }
 0x180   :  { %v394_v39 = vpop.permute.xlu1 %393 }
 0x181   :  { %616 = vmatpush3.xpose.msra.mxu1 %v420_v29  ;;  %v415_v41 = vmul.f32 %v394_v39, %v964_v54 }
 0x182   :  { %v402_v30 = vpop.permute.xlu0 %401  ;;  %617 = vmatprep.subr.mxu1 %v774_v27 }
 0x183   :  { %v419_v31 = vmul.f32 %v402_v30, %v971_v59 }
 0x184   :  { %v390_v43 = vpop.permute.xlu1 %389 }
 0x185   :  { %618 = vmatpush3.xpose.msra.mxu1 %v419_v31  ;;  %v413_v44 = vmul.f32 %v390_v43, %v978_v55 }
 0x186   :  { %619 = vmatprep.subr.mxu1 %v774_v27  ;;  %v396_v35 = vpop.permute.xlu0 %395 }
 0x187   :  { %v416_v37 = vmul.f32 %v396_v35, %v368_v1 }
 0x188   :  { %v386_v47 = vpop.permute.xlu1 %385 }
 0x189   :  { %620 = vmatpush3.xpose.msra.mxu1 %v418_v32  ;;  %v411_v48 = vmul.f32 %v386_v47, %v990_v4 }
 0x18a   :  { %621 = vmatprep.subr.mxu1 %v774_v27  ;;  %v392_v42 = vpop.permute.xlu0 %391 }
 0x18b   :  { %v414_v36 = vmul.f32 %v392_v42, %v366_v6 }
 0x18c   :  { %v382_v52 = vpop.permute.xlu1 %381 }
 0x18d   :  { %622 = vmatpush3.xpose.msra.mxu1 %v417_v34  ;;  %v409_v53 = vmul.f32 %v382_v52, %v1000_v51 }
 0x18e   :  { %623 = vmatprep.subr.mxu1 %v774_v27  ;;  %v388_v45 = vpop.permute.xlu0 %387 }
 0x18f   :  { %v412_v46 = vmul.f32 %v388_v45, %v364_v11 }
 0x190   :  { %v378_v57 = vpop.permute.xlu1 %377 }
 0x191   :  { %624 = vmatpush3.xpose.msra.mxu1 %v416_v37  ;;  %v407_v58 = vmul.f32 %v378_v57, %v1009_v14 }
 0x192   :  { %625 = vmatprep.subr.mxu1 %v774_v27  ;;  %v384_v49 = vpop.permute.xlu0 %383 }
 0x193   :  { %v410_v50 = vmul.f32 %v384_v49, %v362_v16 }
 0x194   :  { %v374_v61 = vpop.permute.xlu1 %373 }
 0x195   :  { %626 = vmatpush3.xpose.msra.mxu1 %v415_v41  ;;  %v405_v55 = vmul.f32 %v374_v61, %v1018_v18 }
 0x196   :  { %627 = vmatprep.subr.mxu1 %v774_v27  ;;  %v380_v54 = vpop.permute.xlu0 %379 }
 0x197   :  { %v408_v56 = vmul.f32 %v380_v54, %v360_v20 }
 0x199   :  { %628 = vmatpush3.xpose.msra.mxu1 %v414_v36 }
 0x19a   :  { %629 = vmatprep.subr.mxu1 %v774_v27  ;;  %v376_v59 = vpop.permute.xlu0 %375 }
 0x19b   :  { %v406_v60 = vmul.f32 %v376_v59, %v1027_v23 }
 0x19d   :  { %630 = vmatpush3.xpose.msra.mxu1 %v413_v44 }
 0x19e   :  { %631 = vmatprep.subr.mxu1 %v774_v27 }
 0x1a1   :  { %632 = vmatpush3.xpose.msra.mxu1 %v412_v46 }
 0x1a2   :  { %633 = vmatprep.subr.mxu1 %v774_v27 }
 0x1a5   :  { %634 = vmatpush3.xpose.msra.mxu1 %v411_v48 }
 0x1a6   :  { %635 = vmatprep.subr.mxu1 %v774_v27 }
 0x1a7   :  { %v426_v63 = vpop.permute.xlu0 %425 }
 0x1a9   :  { %636 = vmatpush3.xpose.msra.mxu1 %v410_v50 }
 0x1aa   :  { %637 = vmatprep.subr.mxu1 %v774_v27 }
 0x1ad   :  { %638 = vmatpush3.xpose.msra.mxu1 %v409_v53 }
 0x1ae   :  { %639 = vmatprep.subr.mxu1 %v774_v27 }
 0x1b1   :  { %640 = vmatpush3.xpose.msra.mxu1 %v408_v56 }
 0x1b2   :  { %641 = vmatprep.subr.mxu1 %v774_v27 }
 0x1b5   :  { %642 = vmatpush3.xpose.msra.mxu1 %v407_v58 }
 0x1b6   :  { %643 = vmatprep.subr.mxu1 %v774_v27 }
 0x1b9   :  { %644 = vmatpush3.xpose.msra.mxu1 %v406_v60 }
 0x1ba   :  { %645 = vmatprep.subr.mxu1 %v774_v27 }
 0x1bd   :  { %646 = vmatpush3.xpose.msra.mxu1 %v405_v55 }
 0x1c0   :  { %648 = vmatmul.mubr.f32.vlgmr.msra.gmra.mxu1 %v421_v62 }
 0x280   :  { %v494_v0 = vpop.f32.mrf.mxu1 }
 0x281   :  { %v495_v1 = vadd.f32 %v494_v0, %v426_v63 }
 0x282   :  { %v649_v2 = vpop.f32.mrf.mxu1 }
 0x283   :  { %498 = vst [vmem:[#allocation2] sm:$0xff] %v495_v1 }
 0x284   :  { %763 = shalt.err (!%p760_p4)
}
 0x285   :  { %508 = dma.vmem_to_hbm [thread:$0]  %s506_s11, 128, %s1072_s5, [#allocation3]  }
 0x286   :  { %772 = dma.done.wait [#allocation3], 128  }
 0x287   :  { %773 = vsyncadd [#allocation3], 4294967168 }
 0x288   :  { %512 = vsyncpa [#allocation3], 1 }

</bundles_post_ra>
